<compile_context>
chip_gen: v7x
topology: tpu7x:2x2x1
jax: 0.10.0
libtpu: 0.0.40
codegen_flags: <defaults>
</compile_context>

<pallas_src>
import math

import jax
import jax.numpy as jnp
from jax import lax
from jax.experimental import pallas as pl
from jax.experimental.pallas import tpu as pltpu

EPS = 1e-5          # InstanceNorm3d default eps
NEG_SLOPE = 0.01    # LeakyReLU default negative_slope


def _inorm_act(x, inv_n):
    """InstanceNorm (per sample over (DH, W), single channel) + LeakyReLU.

    One-pass statistics: two independent reductions (sum, sum of squares)
    instead of mean followed by mean((x - m)^2).
    """
    s1 = jnp.sum(x, axis=(1, 2), keepdims=True)
    s2 = jnp.sum(x * x, axis=(1, 2), keepdims=True)
    m = s1 * inv_n
    v = jnp.maximum(s2 * inv_n - m * m, 0.0)   # guard tiny negative cancellation
    xh = (x - m) * lax.rsqrt(v + EPS)
    return jnp.where(xh >= 0, xh, NEG_SLOPE * xh)


def instance_temperature_kernel(w_ref, seg_ref, dis_ref, out_ref):
    # w_ref: SMEM (4, 4) f32
    #   row 0: [w0_seg, w0_dis, b0, unused]           (1x1x1 conv, 2->1)
    #   row u (1..3): [k_left, k_center, k_right, b]  (1x1x3 conv along W)
    # seg_ref/dis_ref: (T, DH, W) in native dtype; upcast to f32 after load.
    seg = seg_ref[...].astype(jnp.float32)
    dis = dis_ref[...].astype(jnp.float32)

    _, DH, W = seg.shape
    inv_n = 1.0 / float(DH * W)   # static

    # unit_0: pointwise conv over the 2 concatenated channels (VPU FMAs).
    x = w_ref[0, 0] * seg + w_ref[0, 1] * dis + w_ref[0, 2]
    x = _inorm_act(x, inv_n)

    # Boundary masks hoisted out of the unit loop (no re-materialized iota).
    col = lax.broadcasted_iota(jnp.int32, x.shape, 2)
    not_first = col != 0
    not_last = col != (W - 1)

    # units 1..3: 3-tap conv along W with zero padding of 1.
    for u in range(1, 4):
        xl = jnp.where(not_first, jnp.roll(x, 1, axis=2), 0.0)   # x[..., w-1]
        xr = jnp.where(not_last, jnp.roll(x, -1, axis=2), 0.0)   # x[..., w+1]
        x = w_ref[u, 0] * xl + w_ref[u, 1] * x + w_ref[u, 2] * xr + w_ref[u, 3]
        x = _inorm_act(x, inv_n)

    # AdaptiveAvgPool3d(1): per-sample mean over all spatial positions.
    out_ref[...] = (jnp.sum(x, axis=(1, 2), keepdims=True) * inv_n).astype(out_ref.dtype)


def _choose_n_tile(N, per_sample_bytes):
    """Samples per grid step: amortize per-step overhead for tiny slabs, keep
    the per-step DMA modest, keep >= 2 grid steps when N >= 2 (v7x megacore),
    and prefer a divisor of N to avoid padded blocks."""
    budget = 4 << 20
    t = max(1, min(N, budget // max(per_sample_bytes, 1)))
    while t > 1 and pl.cdiv(N, t) < 2:
        t -= 1
    while t > 1 and N % t != 0:
        t -= 1
    return t


def instance_temperature(seg, dis, weights, *, n_tile=None, vmem_limit_bytes=None):
    """seg, dis: (N, 1, D, H, W) NCDHW (any float dtype). Returns (N,1,1,1,1) f32."""
    N, C, D, H, W = seg.shape
    assert C == 1 and dis.shape == seg.shape
    DH = D * H
    # Keep native dtype in HBM (bf16 stays bf16); the kernel upcasts to f32.
    seg2 = seg.reshape(N, DH, W)
    dis2 = dis.reshape(N, DH, W)

    per_sample_bytes = 2 * DH * W * seg2.dtype.itemsize   # seg + dis
    if n_tile is None:
        n_tile = _choose_n_tile(N, per_sample_bytes)
    grid_n = pl.cdiv(N, n_tile)

    if vmem_limit_bytes is None:
        # 2 inputs x 2 pipeline buffers x block, plus ~5 live f32 slabs of
        # working set (x, xl, xr, masks, norm temp) and 1 MiB headroom.
        need = (2 * n_tile * per_sample_bytes
                + 5 * n_tile * DH * W * 4
                + (1 << 20))
        vmem_limit_bytes = min(max(need, 16 << 20), 64 << 20)   # v7x-safe cap

    out = pl.pallas_call(
        instance_temperature_kernel,
        out_shape=jax.ShapeDtypeStruct((N, 1, 1), jnp.float32),
        grid=(grid_n,),
        in_specs=[
            pl.BlockSpec(memory_space=pltpu.MemorySpace.SMEM),        # weights (4,4)
            pl.BlockSpec((n_tile, DH, W), lambda n: (n, 0, 0)),       # seg slabs
            pl.BlockSpec((n_tile, DH, W), lambda n: (n, 0, 0)),       # dis slabs
        ],
        out_specs=pl.BlockSpec((n_tile, 1, 1), lambda n: (n, 0, 0)),
        compiler_params=pltpu.CompilerParams(
            dimension_semantics=("parallel",),
            vmem_limit_bytes=vmem_limit_bytes),
    )(weights, seg2, dis2)
    return out.reshape(N, 1, 1, 1, 1)


def init_weights():
    """Deterministic synthetic parameters packed into a (4, 4) f32 table."""
    ks = jax.random.split(jax.random.PRNGKey(1), 8)
    w = jnp.zeros((4, 4), jnp.float32)
    # unit_0: Conv3d(2->1, k=1) weights (2,) + bias
    w = w.at[0, 0:2].set(jax.random.normal(ks[0], (2,)) * (1.0 / math.sqrt(2.0)))
    w = w.at[0, 2].set(jax.random.normal(ks[1], ()) * 0.1)
    # units 1..3: Conv3d(1->1, k=(1,1,3)) weights (3,) + bias
    for u in range(1, 4):
        w = w.at[u, 0:3].set(jax.random.normal(ks[2 * u], (3,)) * (1.0 / math.sqrt(3.0)))
        w = w.at[u, 3].set(jax.random.normal(ks[2 * u + 1], ()) * 0.1)
    return w


def reference(seg, dis, weights):
    """Pure-JAX reference of the same pipeline (NCDHW)."""
    x = weights[0, 0] * seg[:, 0] + weights[0, 1] * dis[:, 0] + weights[0, 2]  # (N,D,H,W) f32

    def ina(x):
        m = x.mean(axis=(1, 2, 3), keepdims=True)
        v = ((x - m) ** 2).mean(axis=(1, 2, 3), keepdims=True)
        xh = (x - m) / jnp.sqrt(v + EPS)
        return jnp.where(xh >= 0, xh, NEG_SLOPE * xh)

    x = ina(x)
    for u in range(1, 4):
        xp = jnp.pad(x, ((0, 0), (0, 0), (0, 0), (1, 1)))
        x = (weights[u, 0] * xp[..., :-2] + weights[u, 1] * xp[..., 1:-1]
             + weights[u, 2] * xp[..., 2:] + weights[u, 3])
        x = ina(x)
    return x.mean(axis=(1, 2, 3)).reshape(-1, 1, 1, 1, 1)


if __name__ == "__main__":
    weights = init_weights()

    # Primary check: lane-dense W (128), f32 inputs.
    N, D, H, W = 2, 4, 4, 128
    k_seg, k_dis = jax.random.split(jax.random.PRNGKey(0))
    seg = jax.random.normal(k_seg, (N, 1, D, H, W), jnp.float32)
    dis = jax.random.normal(k_dis, (N, 1, D, H, W), jnp.float32)

    out = jax.block_until_ready(instance_temperature(seg, dis, weights))
    ref = reference(seg, dis, weights)
    assert out.shape == (N, 1, 1, 1, 1)
    assert jnp.allclose(out, ref, rtol=1e-3, atol=1e-4), (out.ravel(), ref.ravel())

    # Secondary check: narrow W, odd DH, bf16 inputs kept in HBM as bf16
    # (upcast to f32 inside the kernel).
    N2, D2, H2, W2 = 2, 3, 5, 16
    k2a, k2b = jax.random.split(jax.random.PRNGKey(2))
    seg_b = jax.random.normal(k2a, (N2, 1, D2, H2, W2), jnp.float32).astype(jnp.bfloat16)
    dis_b = jax.random.normal(k2b, (N2, 1, D2, H2, W2), jnp.float32).astype(jnp.bfloat16)
    out_b = jax.block_until_ready(instance_temperature(seg_b, dis_b, weights))
    ref_b = reference(seg_b, dis_b, weights)
    assert out_b.shape == (N2, 1, 1, 1, 1)
    assert jnp.allclose(out_b, ref_b, rtol=2e-3, atol=2e-3), (out_b.ravel(), ref_b.ravel())

    print("KERNEL_OK")
</pallas_src>

<mosaic_0001>
module attributes {stable_mosaic.version = 11 : i64} {
  func.func @instance_temperature_kernel(%arg0: i32, %arg1: memref<4x4xf32, #tpu.memory_space<smem>>, %arg2: memref<1x16x128xf32, #tpu.memory_space<vmem>>, %arg3: memref<1x16x128xf32, #tpu.memory_space<vmem>>, %arg4: memref<1x1x1xf32, #tpu.memory_space<vmem>>) attributes {dimension_semantics = [#tpu.dimension_semantics<parallel>], iteration_bounds = array<i64: 2>, scalar_prefetch = 0 : i64, scratch_operands = 0 : i64, tpu.core_type = #tpu.core_type<tc>, window_params = [{transform_indices = @transform_0, window_bounds = array<i64: 4, 4>}, {transform_indices = @transform_1, window_bounds = array<i64: 1, 16, 128>}, {transform_indices = @transform_2, window_bounds = array<i64: 1, 16, 128>}, {transform_indices = @transform_3, window_bounds = array<i64: 1, 1, 1>}]} {
    %c0 = arith.constant 0 : index
    %c0_0 = arith.constant 0 : index
    %c0_1 = arith.constant 0 : index
    %0 = vector.load %arg2[%c0, %c0_0, %c0_1] : memref<1x16x128xf32, #tpu.memory_space<vmem>>, vector<1x16x128xf32>
    %c0_2 = arith.constant 0 : index
    %c0_3 = arith.constant 0 : index
    %c0_4 = arith.constant 0 : index
    %1 = vector.load %arg3[%c0_2, %c0_3, %c0_4] : memref<1x16x128xf32, #tpu.memory_space<vmem>>, vector<1x16x128xf32>
    %c0_5 = arith.constant 0 : index
    %c0_6 = arith.constant 0 : index
    %2 = memref.load %arg1[%c0_5, %c0_6] : memref<4x4xf32, #tpu.memory_space<smem>>
    %3 = vector.broadcast %2 : f32 to vector<1x16x128xf32>
    %4 = arith.mulf %3, %0 : vector<1x16x128xf32>
    %c0_7 = arith.constant 0 : index
    %c1 = arith.constant 1 : index
    %5 = memref.load %arg1[%c0_7, %c1] : memref<4x4xf32, #tpu.memory_space<smem>>
    %6 = vector.broadcast %5 : f32 to vector<1x16x128xf32>
    %7 = arith.mulf %6, %1 : vector<1x16x128xf32>
    %8 = arith.addf %4, %7 : vector<1x16x128xf32>
    %c0_8 = arith.constant 0 : index
    %c2 = arith.constant 2 : index
    %9 = memref.load %arg1[%c0_8, %c2] : memref<4x4xf32, #tpu.memory_space<smem>>
    %10 = vector.broadcast %9 : f32 to vector<1x16x128xf32>
    %11 = arith.addf %8, %10 : vector<1x16x128xf32>
    %cst = arith.constant dense<0.000000e+00> : vector<1xf32>
    %12 = vector.multi_reduction <add>, %11, %cst [1, 2] : vector<1x16x128xf32> to vector<1xf32>
    %13 = vector.shape_cast %12 : vector<1xf32> to vector<1x1x1xf32>
    %14 = arith.mulf %11, %11 : vector<1x16x128xf32>
    %cst_9 = arith.constant dense<0.000000e+00> : vector<1xf32>
    %15 = vector.multi_reduction <add>, %14, %cst_9 [1, 2] : vector<1x16x128xf32> to vector<1xf32>
    %16 = vector.shape_cast %15 : vector<1xf32> to vector<1x1x1xf32>
    %cst_10 = arith.constant 4.8828125E-4 : f32
    %17 = vector.broadcast %cst_10 : f32 to vector<1x1x1xf32>
    %18 = arith.mulf %13, %17 : vector<1x1x1xf32>
    %cst_11 = arith.constant 4.8828125E-4 : f32
    %19 = vector.broadcast %cst_11 : f32 to vector<1x1x1xf32>
    %20 = arith.mulf %16, %19 : vector<1x1x1xf32>
    %21 = arith.mulf %18, %18 : vector<1x1x1xf32>
    %22 = arith.subf %20, %21 : vector<1x1x1xf32>
    %cst_12 = arith.constant 0.000000e+00 : f32
    %23 = vector.broadcast %cst_12 : f32 to vector<1x1x1xf32>
    %24 = arith.maximumf %22, %23 : vector<1x1x1xf32>
    %25 = vector.broadcast %18 : vector<1x1x1xf32> to vector<1x16x128xf32>
    %26 = arith.subf %11, %25 : vector<1x16x128xf32>
    %cst_13 = arith.constant 9.99999974E-6 : f32
    %27 = vector.broadcast %cst_13 : f32 to vector<1x1x1xf32>
    %28 = arith.addf %24, %27 : vector<1x1x1xf32>
    %29 = math.rsqrt %28 : vector<1x1x1xf32>
    %30 = vector.broadcast %29 : vector<1x1x1xf32> to vector<1x16x128xf32>
    %31 = arith.mulf %26, %30 : vector<1x16x128xf32>
    %cst_14 = arith.constant 0.000000e+00 : f32
    %32 = vector.broadcast %cst_14 : f32 to vector<1x16x128xf32>
    %33 = arith.cmpf oge, %31, %32 : vector<1x16x128xf32>
    %cst_15 = arith.constant 0.00999999977 : f32
    %34 = vector.broadcast %cst_15 : f32 to vector<1x16x128xf32>
    %35 = arith.mulf %34, %31 : vector<1x16x128xf32>
    %36 = arith.select %33, %31, %35 : vector<1x16x128xi1>, vector<1x16x128xf32>
    %37 = tpu.iota {dimensions = array<i32: 2>} : vector<1x16x128xi32>
    %c0_i32 = arith.constant 0 : i32
    %38 = vector.broadcast %c0_i32 : i32 to vector<1x16x128xi32>
    %39 = arith.cmpi ne, %37, %38 : vector<1x16x128xi32>
    %c127_i32 = arith.constant 127 : i32
    %40 = vector.broadcast %c127_i32 : i32 to vector<1x16x128xi32>
    %41 = arith.cmpi ne, %37, %40 : vector<1x16x128xi32>
    %42 = vector.extract_strided_slice %36 {offsets = [0, 0, 127], sizes = [1, 16, 1], strides = [1, 1, 1]} : vector<1x16x128xf32> to vector<1x16x1xf32>
    %43 = vector.extract_strided_slice %36 {offsets = [0, 0, 0], sizes = [1, 16, 127], strides = [1, 1, 1]} : vector<1x16x128xf32> to vector<1x16x127xf32>
    %44 = tpu.concatenate %42, %43 in 2 : vector<1x16x1xf32>, vector<1x16x127xf32> -> vector<1x16x128xf32>
    %cst_16 = arith.constant 0.000000e+00 : f32
    %45 = vector.broadcast %cst_16 : f32 to vector<1x16x128xf32>
    %46 = arith.select %39, %44, %45 : vector<1x16x128xi1>, vector<1x16x128xf32>
    %47 = vector.extract_strided_slice %36 {offsets = [0, 0, 1], sizes = [1, 16, 127], strides = [1, 1, 1]} : vector<1x16x128xf32> to vector<1x16x127xf32>
    %48 = vector.extract_strided_slice %36 {offsets = [0, 0, 0], sizes = [1, 16, 1], strides = [1, 1, 1]} : vector<1x16x128xf32> to vector<1x16x1xf32>
    %49 = tpu.concatenate %47, %48 in 2 : vector<1x16x127xf32>, vector<1x16x1xf32> -> vector<1x16x128xf32>
    %cst_17 = arith.constant 0.000000e+00 : f32
    %50 = vector.broadcast %cst_17 : f32 to vector<1x16x128xf32>
    %51 = arith.select %41, %49, %50 : vector<1x16x128xi1>, vector<1x16x128xf32>
    %c1_18 = arith.constant 1 : index
    %c0_19 = arith.constant 0 : index
    %52 = memref.load %arg1[%c1_18, %c0_19] : memref<4x4xf32, #tpu.memory_space<smem>>
    %53 = vector.broadcast %52 : f32 to vector<1x16x128xf32>
    %54 = arith.mulf %53, %46 : vector<1x16x128xf32>
    %c1_20 = arith.constant 1 : index
    %c1_21 = arith.constant 1 : index
    %55 = memref.load %arg1[%c1_20, %c1_21] : memref<4x4xf32, #tpu.memory_space<smem>>
    %56 = vector.broadcast %55 : f32 to vector<1x16x128xf32>
    %57 = arith.mulf %56, %36 : vector<1x16x128xf32>
    %58 = arith.addf %54, %57 : vector<1x16x128xf32>
    %c1_22 = arith.constant 1 : index
    %c2_23 = arith.constant 2 : index
    %59 = memref.load %arg1[%c1_22, %c2_23] : memref<4x4xf32, #tpu.memory_space<smem>>
    %60 = vector.broadcast %59 : f32 to vector<1x16x128xf32>
    %61 = arith.mulf %60, %51 : vector<1x16x128xf32>
    %62 = arith.addf %58, %61 : vector<1x16x128xf32>
    %c1_24 = arith.constant 1 : index
    %c3 = arith.constant 3 : index
    %63 = memref.load %arg1[%c1_24, %c3] : memref<4x4xf32, #tpu.memory_space<smem>>
    %64 = vector.broadcast %63 : f32 to vector<1x16x128xf32>
    %65 = arith.addf %62, %64 : vector<1x16x128xf32>
    %cst_25 = arith.constant dense<0.000000e+00> : vector<1xf32>
    %66 = vector.multi_reduction <add>, %65, %cst_25 [1, 2] : vector<1x16x128xf32> to vector<1xf32>
    %67 = vector.shape_cast %66 : vector<1xf32> to vector<1x1x1xf32>
    %68 = arith.mulf %65, %65 : vector<1x16x128xf32>
    %cst_26 = arith.constant dense<0.000000e+00> : vector<1xf32>
    %69 = vector.multi_reduction <add>, %68, %cst_26 [1, 2] : vector<1x16x128xf32> to vector<1xf32>
    %70 = vector.shape_cast %69 : vector<1xf32> to vector<1x1x1xf32>
    %cst_27 = arith.constant 4.8828125E-4 : f32
    %71 = vector.broadcast %cst_27 : f32 to vector<1x1x1xf32>
    %72 = arith.mulf %67, %71 : vector<1x1x1xf32>
    %cst_28 = arith.constant 4.8828125E-4 : f32
    %73 = vector.broadcast %cst_28 : f32 to vector<1x1x1xf32>
    %74 = arith.mulf %70, %73 : vector<1x1x1xf32>
    %75 = arith.mulf %72, %72 : vector<1x1x1xf32>
    %76 = arith.subf %74, %75 : vector<1x1x1xf32>
    %cst_29 = arith.constant 0.000000e+00 : f32
    %77 = vector.broadcast %cst_29 : f32 to vector<1x1x1xf32>
    %78 = arith.maximumf %76, %77 : vector<1x1x1xf32>
    %79 = vector.broadcast %72 : vector<1x1x1xf32> to vector<1x16x128xf32>
    %80 = arith.subf %65, %79 : vector<1x16x128xf32>
    %cst_30 = arith.constant 9.99999974E-6 : f32
    %81 = vector.broadcast %cst_30 : f32 to vector<1x1x1xf32>
    %82 = arith.addf %78, %81 : vector<1x1x1xf32>
    %83 = math.rsqrt %82 : vector<1x1x1xf32>
    %84 = vector.broadcast %83 : vector<1x1x1xf32> to vector<1x16x128xf32>
    %85 = arith.mulf %80, %84 : vector<1x16x128xf32>
    %cst_31 = arith.constant 0.000000e+00 : f32
    %86 = vector.broadcast %cst_31 : f32 to vector<1x16x128xf32>
    %87 = arith.cmpf oge, %85, %86 : vector<1x16x128xf32>
    %cst_32 = arith.constant 0.00999999977 : f32
    %88 = vector.broadcast %cst_32 : f32 to vector<1x16x128xf32>
    %89 = arith.mulf %88, %85 : vector<1x16x128xf32>
    %90 = arith.select %87, %85, %89 : vector<1x16x128xi1>, vector<1x16x128xf32>
    %91 = vector.extract_strided_slice %90 {offsets = [0, 0, 127], sizes = [1, 16, 1], strides = [1, 1, 1]} : vector<1x16x128xf32> to vector<1x16x1xf32>
    %92 = vector.extract_strided_slice %90 {offsets = [0, 0, 0], sizes = [1, 16, 127], strides = [1, 1, 1]} : vector<1x16x128xf32> to vector<1x16x127xf32>
    %93 = tpu.concatenate %91, %92 in 2 : vector<1x16x1xf32>, vector<1x16x127xf32> -> vector<1x16x128xf32>
    %cst_33 = arith.constant 0.000000e+00 : f32
    %94 = vector.broadcast %cst_33 : f32 to vector<1x16x128xf32>
    %95 = arith.select %39, %93, %94 : vector<1x16x128xi1>, vector<1x16x128xf32>
    %96 = vector.extract_strided_slice %90 {offsets = [0, 0, 1], sizes = [1, 16, 127], strides = [1, 1, 1]} : vector<1x16x128xf32> to vector<1x16x127xf32>
    %97 = vector.extract_strided_slice %90 {offsets = [0, 0, 0], sizes = [1, 16, 1], strides = [1, 1, 1]} : vector<1x16x128xf32> to vector<1x16x1xf32>
    %98 = tpu.concatenate %96, %97 in 2 : vector<1x16x127xf32>, vector<1x16x1xf32> -> vector<1x16x128xf32>
    %cst_34 = arith.constant 0.000000e+00 : f32
    %99 = vector.broadcast %cst_34 : f32 to vector<1x16x128xf32>
    %100 = arith.select %41, %98, %99 : vector<1x16x128xi1>, vector<1x16x128xf32>
    %c2_35 = arith.constant 2 : index
    %c0_36 = arith.constant 0 : index
    %101 = memref.load %arg1[%c2_35, %c0_36] : memref<4x4xf32, #tpu.memory_space<smem>>
    %102 = vector.broadcast %101 : f32 to vector<1x16x128xf32>
    %103 = arith.mulf %102, %95 : vector<1x16x128xf32>
    %c2_37 = arith.constant 2 : index
    %c1_38 = arith.constant 1 : index
    %104 = memref.load %arg1[%c2_37, %c1_38] : memref<4x4xf32, #tpu.memory_space<smem>>
    %105 = vector.broadcast %104 : f32 to vector<1x16x128xf32>
    %106 = arith.mulf %105, %90 : vector<1x16x128xf32>
    %107 = arith.addf %103, %106 : vector<1x16x128xf32>
    %c2_39 = arith.constant 2 : index
    %c2_40 = arith.constant 2 : index
    %108 = memref.load %arg1[%c2_39, %c2_40] : memref<4x4xf32, #tpu.memory_space<smem>>
    %109 = vector.broadcast %108 : f32 to vector<1x16x128xf32>
    %110 = arith.mulf %109, %100 : vector<1x16x128xf32>
    %111 = arith.addf %107, %110 : vector<1x16x128xf32>
    %c2_41 = arith.constant 2 : index
    %c3_42 = arith.constant 3 : index
    %112 = memref.load %arg1[%c2_41, %c3_42] : memref<4x4xf32, #tpu.memory_space<smem>>
    %113 = vector.broadcast %112 : f32 to vector<1x16x128xf32>
    %114 = arith.addf %111, %113 : vector<1x16x128xf32>
    %cst_43 = arith.constant dense<0.000000e+00> : vector<1xf32>
    %115 = vector.multi_reduction <add>, %114, %cst_43 [1, 2] : vector<1x16x128xf32> to vector<1xf32>
    %116 = vector.shape_cast %115 : vector<1xf32> to vector<1x1x1xf32>
    %117 = arith.mulf %114, %114 : vector<1x16x128xf32>
    %cst_44 = arith.constant dense<0.000000e+00> : vector<1xf32>
    %118 = vector.multi_reduction <add>, %117, %cst_44 [1, 2] : vector<1x16x128xf32> to vector<1xf32>
    %119 = vector.shape_cast %118 : vector<1xf32> to vector<1x1x1xf32>
    %cst_45 = arith.constant 4.8828125E-4 : f32
    %120 = vector.broadcast %cst_45 : f32 to vector<1x1x1xf32>
    %121 = arith.mulf %116, %120 : vector<1x1x1xf32>
    %cst_46 = arith.constant 4.8828125E-4 : f32
    %122 = vector.broadcast %cst_46 : f32 to vector<1x1x1xf32>
    %123 = arith.mulf %119, %122 : vector<1x1x1xf32>
    %124 = arith.mulf %121, %121 : vector<1x1x1xf32>
    %125 = arith.subf %123, %124 : vector<1x1x1xf32>
    %cst_47 = arith.constant 0.000000e+00 : f32
    %126 = vector.broadcast %cst_47 : f32 to vector<1x1x1xf32>
    %127 = arith.maximumf %125, %126 : vector<1x1x1xf32>
    %128 = vector.broadcast %121 : vector<1x1x1xf32> to vector<1x16x128xf32>
    %129 = arith.subf %114, %128 : vector<1x16x128xf32>
    %cst_48 = arith.constant 9.99999974E-6 : f32
    %130 = vector.broadcast %cst_48 : f32 to vector<1x1x1xf32>
    %131 = arith.addf %127, %130 : vector<1x1x1xf32>
    %132 = math.rsqrt %131 : vector<1x1x1xf32>
    %133 = vector.broadcast %132 : vector<1x1x1xf32> to vector<1x16x128xf32>
    %134 = arith.mulf %129, %133 : vector<1x16x128xf32>
    %cst_49 = arith.constant 0.000000e+00 : f32
    %135 = vector.broadcast %cst_49 : f32 to vector<1x16x128xf32>
    %136 = arith.cmpf oge, %134, %135 : vector<1x16x128xf32>
    %cst_50 = arith.constant 0.00999999977 : f32
    %137 = vector.broadcast %cst_50 : f32 to vector<1x16x128xf32>
    %138 = arith.mulf %137, %134 : vector<1x16x128xf32>
    %139 = arith.select %136, %134, %138 : vector<1x16x128xi1>, vector<1x16x128xf32>
    %140 = vector.extract_strided_slice %139 {offsets = [0, 0, 127], sizes = [1, 16, 1], strides = [1, 1, 1]} : vector<1x16x128xf32> to vector<1x16x1xf32>
    %141 = vector.extract_strided_slice %139 {offsets = [0, 0, 0], sizes = [1, 16, 127], strides = [1, 1, 1]} : vector<1x16x128xf32> to vector<1x16x127xf32>
    %142 = tpu.concatenate %140, %141 in 2 : vector<1x16x1xf32>, vector<1x16x127xf32> -> vector<1x16x128xf32>
    %cst_51 = arith.constant 0.000000e+00 : f32
    %143 = vector.broadcast %cst_51 : f32 to vector<1x16x128xf32>
    %144 = arith.select %39, %142, %143 : vector<1x16x128xi1>, vector<1x16x128xf32>
    %145 = vector.extract_strided_slice %139 {offsets = [0, 0, 1], sizes = [1, 16, 127], strides = [1, 1, 1]} : vector<1x16x128xf32> to vector<1x16x127xf32>
    %146 = vector.extract_strided_slice %139 {offsets = [0, 0, 0], sizes = [1, 16, 1], strides = [1, 1, 1]} : vector<1x16x128xf32> to vector<1x16x1xf32>
    %147 = tpu.concatenate %145, %146 in 2 : vector<1x16x127xf32>, vector<1x16x1xf32> -> vector<1x16x128xf32>
    %cst_52 = arith.constant 0.000000e+00 : f32
    %148 = vector.broadcast %cst_52 : f32 to vector<1x16x128xf32>
    %149 = arith.select %41, %147, %148 : vector<1x16x128xi1>, vector<1x16x128xf32>
    %c3_53 = arith.constant 3 : index
    %c0_54 = arith.constant 0 : index
    %150 = memref.load %arg1[%c3_53, %c0_54] : memref<4x4xf32, #tpu.memory_space<smem>>
    %151 = vector.broadcast %150 : f32 to vector<1x16x128xf32>
    %152 = arith.mulf %151, %144 : vector<1x16x128xf32>
    %c3_55 = arith.constant 3 : index
    %c1_56 = arith.constant 1 : index
    %153 = memref.load %arg1[%c3_55, %c1_56] : memref<4x4xf32, #tpu.memory_space<smem>>
    %154 = vector.broadcast %153 : f32 to vector<1x16x128xf32>
    %155 = arith.mulf %154, %139 : vector<1x16x128xf32>
    %156 = arith.addf %152, %155 : vector<1x16x128xf32>
    %c3_57 = arith.constant 3 : index
    %c2_58 = arith.constant 2 : index
    %157 = memref.load %arg1[%c3_57, %c2_58] : memref<4x4xf32, #tpu.memory_space<smem>>
    %158 = vector.broadcast %157 : f32 to vector<1x16x128xf32>
    %159 = arith.mulf %158, %149 : vector<1x16x128xf32>
    %160 = arith.addf %156, %159 : vector<1x16x128xf32>
    %c3_59 = arith.constant 3 : index
    %c3_60 = arith.constant 3 : index
    %161 = memref.load %arg1[%c3_59, %c3_60] : memref<4x4xf32, #tpu.memory_space<smem>>
    %162 = vector.broadcast %161 : f32 to vector<1x16x128xf32>
    %163 = arith.addf %160, %162 : vector<1x16x128xf32>
    %cst_61 = arith.constant dense<0.000000e+00> : vector<1xf32>
    %164 = vector.multi_reduction <add>, %163, %cst_61 [1, 2] : vector<1x16x128xf32> to vector<1xf32>
    %165 = vector.shape_cast %164 : vector<1xf32> to vector<1x1x1xf32>
    %166 = arith.mulf %163, %163 : vector<1x16x128xf32>
    %cst_62 = arith.constant dense<0.000000e+00> : vector<1xf32>
    %167 = vector.multi_reduction <add>, %166, %cst_62 [1, 2] : vector<1x16x128xf32> to vector<1xf32>
    %168 = vector.shape_cast %167 : vector<1xf32> to vector<1x1x1xf32>
    %cst_63 = arith.constant 4.8828125E-4 : f32
    %169 = vector.broadcast %cst_63 : f32 to vector<1x1x1xf32>
    %170 = arith.mulf %165, %169 : vector<1x1x1xf32>
    %cst_64 = arith.constant 4.8828125E-4 : f32
    %171 = vector.broadcast %cst_64 : f32 to vector<1x1x1xf32>
    %172 = arith.mulf %168, %171 : vector<1x1x1xf32>
    %173 = arith.mulf %170, %170 : vector<1x1x1xf32>
    %174 = arith.subf %172, %173 : vector<1x1x1xf32>
    %cst_65 = arith.constant 0.000000e+00 : f32
    %175 = vector.broadcast %cst_65 : f32 to vector<1x1x1xf32>
    %176 = arith.maximumf %174, %175 : vector<1x1x1xf32>
    %177 = vector.broadcast %170 : vector<1x1x1xf32> to vector<1x16x128xf32>
    %178 = arith.subf %163, %177 : vector<1x16x128xf32>
    %cst_66 = arith.constant 9.99999974E-6 : f32
    %179 = vector.broadcast %cst_66 : f32 to vector<1x1x1xf32>
    %180 = arith.addf %176, %179 : vector<1x1x1xf32>
    %181 = math.rsqrt %180 : vector<1x1x1xf32>
    %182 = vector.broadcast %181 : vector<1x1x1xf32> to vector<1x16x128xf32>
    %183 = arith.mulf %178, %182 : vector<1x16x128xf32>
    %cst_67 = arith.constant 0.000000e+00 : f32
    %184 = vector.broadcast %cst_67 : f32 to vector<1x16x128xf32>
    %185 = arith.cmpf oge, %183, %184 : vector<1x16x128xf32>
    %cst_68 = arith.constant 0.00999999977 : f32
    %186 = vector.broadcast %cst_68 : f32 to vector<1x16x128xf32>
    %187 = arith.mulf %186, %183 : vector<1x16x128xf32>
    %188 = arith.select %185, %183, %187 : vector<1x16x128xi1>, vector<1x16x128xf32>
    %cst_69 = arith.constant dense<0.000000e+00> : vector<1xf32>
    %189 = vector.multi_reduction <add>, %188, %cst_69 [1, 2] : vector<1x16x128xf32> to vector<1xf32>
    %190 = vector.shape_cast %189 : vector<1xf32> to vector<1x1x1xf32>
    %cst_70 = arith.constant 4.8828125E-4 : f32
    %191 = vector.broadcast %cst_70 : f32 to vector<1x1x1xf32>
    %192 = arith.mulf %190, %191 : vector<1x1x1xf32>
    %c0_71 = arith.constant 0 : index
    %c0_72 = arith.constant 0 : index
    %c0_73 = arith.constant 0 : index
    %193 = vector.load %arg4[%c0_71, %c0_72, %c0_73] : memref<1x1x1xf32, #tpu.memory_space<vmem>>, vector<1x1x1xf32>
    tpu.vector_store %arg4[%c0_71, %c0_72, %c0_73], %192 {strides = array<i32>} : memref<1x1x1xf32, #tpu.memory_space<vmem>>, vector<1x1x1xf32>,
    return
  }
  func.func @transform_0(%arg0: i32) -> (i32, i32) {
    %c0_i32 = arith.constant 0 : i32
    %c0_i32_0 = arith.constant 0 : i32
    %c0_i32_1 = arith.constant 0 : i32
    return %c0_i32, %c0_i32_0 : i32, i32
  }
  func.func @transform_1(%arg0: i32) -> (i32, i32, i32) {
    %c0_i32 = arith.constant 0 : i32
    %c0_i32_0 = arith.constant 0 : i32
    %c0_i32_1 = arith.constant 0 : i32
    return %arg0, %c0_i32, %c0_i32_0 : i32, i32, i32
  }
  func.func @transform_2(%arg0: i32) -> (i32, i32, i32) {
    %c0_i32 = arith.constant 0 : i32
    %c0_i32_0 = arith.constant 0 : i32
    %c0_i32_1 = arith.constant 0 : i32
    return %arg0, %c0_i32, %c0_i32_0 : i32, i32, i32
  }
  func.func @transform_3(%arg0: i32) -> (i32, i32, i32) {
    %c0_i32 = arith.constant 0 : i32
    %c0_i32_0 = arith.constant 0 : i32
    %c0_i32_1 = arith.constant 0 : i32
    return %arg0, %c0_i32, %c0_i32_0 : i32, i32, i32
  }
}

</mosaic_0001>

<bundles_post_ra>
// kernel: tpu_custom_call.1
= control target key start
LH: loop header
LB: loop body
LE: loop exit
PB: predicated region body
PF: predicated region fallthrough
CT: control target
= control target key end

     0   :  { %8 = vsyncpa [#allocation4], 0  ;;  %s1100_s0 = inlined_call_operand.hbm [shape: f32[4,4], index: 0, kind: input, shape index: {}]   ;;  %s1101_s1 = inlined_call_operand.hbm [shape: f32[2,16,128], index: 1, kind: input, shape index: {}]   ;;  %s1102_s2 = inlined_call_operand.hbm [shape: f32[2,16,128], index: 2, kind: input, shape index: {}]   ;;  %s1103_s3 = inlined_call_operand.vmem [shape: f32[2,1,1], index: 3, kind: output, shape index: {}]  }
   0x1   :  { %9 = vsyncpa [#allocation3], 0 }
   0x2   :  { %11 = vsyncpa [#allocation3 + $0x1], 0 }
   0x3   :  { %12 = vsyncpa [#allocation7], 0 }
   0x4   :  { %14 = vsyncpa [#allocation7 + $0x1], 0  ;;  %s872_s12 = smov 0   ;;  %s874_s13 = smov 0  }
   0x5   :  { %s876_s14 = smov 0   ;;  %s878_s15 = smov 0  }
   0x6 LB: > { %s891_s16 = sadd.s32 4294967295, %s843_s15   ;;  %s894_s17 = sadd.s32 1, %s843_s15   ;;  %s843_s15 = sphi %s878_s15, %s1115_s15   ;;  %s839_s14 = sphi %s876_s14, %s1114_s14   ;;  %s835_s13 = sphi %s874_s13, %s1113_s13   ;;  %s831_s12 = sphi %s872_s12, %s1112_s12  }
   0x7   : > { %s45_s18 = ssub.s32 %s843_s15, %s894_s17  ;;  %s48_s19 = sadd.s32 1, %s839_s14 }
   0x8   : > { %p46_p0 = scmp.eq.s32.totalorder %s45_s18, 0  ;;  %p55_p1 = scmp.ne.s32.totalorder %s839_s14, %s835_s13 }
   0x9   : > { %p56_p2 = scmp.eq.s32.totalorder %s843_s15, 0  ;;  %p61_p3 = scmp.ne.s32.totalorder %s835_s13, %s831_s12 }
   0xa   : > { %s904_s20 = scalar_select %p46_p0, %s839_s14, %s48_s19  }
   0xb   : > { %p57_p4 = por %p56_p2, %p55_p1  ;;  %p1104_p5 = scmp.eq.s32.totalorder %s891_s16, 0 }
   0xc   : > { %p630_p6 = scmp.ge.s32.totalorder %s843_s15, 1  ;;  %p124_p7 = scmp.lt.s32.totalorder %s843_s15, 3 }
   0xd   : > { %p911_p8 = por %p1104_p5, %p61_p3  ;;  %p681_p10 = scmp.lt.s32.totalorder %s843_s15, 2 }
   0xe   : > { %p915_p9 = pnand %p630_p6, %p124_p7  ;;  %s923_s23 = sand.u32 1, %s839_s14  }
   0xf   : > { %s1106_s21 = scalar_select %p911_p8, 1, 0 }
  0x10   : > { %p669_p11 = pneg %p915_p9  ;;  %p925_p12 = pnand %p681_p10, %p57_p4 }
  0x11   : > { %s633_s25 = sshll.u32 %s923_s23, 4  ;;  %s659_s26 = sshll.u32 %s843_s15, 8 }
  0x12   : > { %p670_p13 = pnand %p669_p11, %p1104_p5  ;;  %s728_s29 = scalar_lea.hbm %s1100_s0, 64 }
  0x13   : > { %p729_p0 = scmp.ne.s32.totalorder %s1100_s0, %s728_s29  ;;  %p735_p4 = scmp.lt.u32.totalorder %s728_s29, %s1100_s0 }
  0x14   : > { %p730_p1 = pneg %p670_p13 }
  0x16   : > { %p731_p2 = pnand %p730_p1, %p729_p0 }
  0x18   : > { %p732_p3 = pneg %p731_p2 }
  0x1a   : > { %p737_p6 = pnand %p735_p4, %p732_p3 }
  0x1c   : > { %740 = shalt.err (!%p737_p6)
}
  0x1d   : > { %s845_s7 = smov [#allocation2]   ;;  %s950_s12 = scalar_lea.hbm %s1101_s1, %s659_s26 }
  0x1e   : > { %672 = dma.hbm_to_smem (!%p670_p13), %s1100_s0, 64, %s845_s7, [#allocation4]  }
  0x1f   : > { %s150_s18 = scalar_lea.vmem [#allocation5], %s633_s25  ;;  %s147_s27 = scalar_lea.sflag [#allocation3], %s923_s23 }
  0x20   : > { %s157_s19 = sshll.u32 %s150_s18, 4  ;;  %s741_s28 = scalar_lea.hbm %s950_s12, 256  ;;  %s954_s19 = int_to_ptr.vmem [resolvable:$true] %s157_s19 }
  0x21   : > { %p742_p7 = scmp.ne.s32.totalorder %s950_s12, %s741_s28  ;;  %p743_p10 = pneg %p925_p12 }
  0x22   : > { %s746_s4 = scalar_lea.hbm %s1101_s1, 512  ;;  %p747_p0 = scmp.lt.u32.totalorder %s950_s12, %s1101_s1 }
  0x23   : > { %p744_p11 = pnand %p743_p10, %p742_p7  ;;  %p748_p1 = scmp.lt.u32.totalorder %s746_s4, %s741_s28 }
  0x24   : > { %p750_p3 = scmp.lt.u32.totalorder %s741_s28, %s950_s12 }
  0x25   : > { %p745_p13 = pneg %p744_p11  ;;  %p749_p2 = por %p748_p1, %p747_p0 }
  0x27   : > { %p751_p4 = por %p750_p3, %p749_p2 }
  0x29   : > { %p752_p6 = pnand %p751_p4, %p745_p13 }
  0x2b   : > { %755 = shalt.err (!%p752_p6)
}
  0x2c   : > { %s756_s7 = scalar_lea.vmem %s954_s19, 256  ;;  %s846_s8 = smov [#allocation5]  }
  0x2d   : > { %p757_p7 = scmp.ne.s32.totalorder %s954_s19, %s756_s7  ;;  %s761_s9 = sshll.u32 %s846_s8, 4  ;;  %s762_s9 = int_to_ptr.vmem [resolvable:$false] %s761_s9 }
  0x2e   : > { %s763_s10 = scalar_lea.vmem %s762_s9, 512  ;;  %p764_p8 = scmp.lt.s32.totalorder %s954_s19, %s762_s9 }
  0x2f   : > { %p759_p11 = pnand %p757_p7, %p743_p10  ;;  %p765_p0 = scmp.lt.s32.totalorder %s763_s10, %s756_s7 }
  0x31   : > { %p760_p5 = pneg %p759_p11  ;;  %p766_p1 = por %p765_p0, %p764_p8 }
  0x33   : > { %p767_p2 = pnand %p766_p1, %p760_p5 }
  0x35   : > { %770 = shalt.err (!%p767_p2)
}
  0x36   : > { %s847_s11 = smov 128   ;;  %s848_s18 = smov 8  }
  0x37   : > { %676 = dma.hbm_to_vmem [thread:$0]  (!%p925_p12), %s950_s12, 256, %s954_s19, %s147_s27, %s847_s11, %s847_s11, %s848_s18  }
  0x38   : > { %s992_s30 = scalar_lea.hbm %s1102_s2, %s659_s26  ;;  %s171_s4 = scalar_lea.vmem [#allocation6], %s633_s25 }
  0x39   : > { %s178_s5 = sshll.u32 %s171_s4, 4  ;;  %s168_s6 = scalar_lea.sflag [#allocation7], %s923_s23  ;;  %s996_s5 = int_to_ptr.vmem [resolvable:$true] %s178_s5 }
  0x3a   : > { %s771_s7 = scalar_lea.hbm %s992_s30, 256  ;;  %s776_s26 = scalar_lea.hbm %s1102_s2, 512 }
  0x3b   : > { %p772_p5 = scmp.ne.s32.totalorder %s992_s30, %s771_s7  ;;  %p777_p3 = scmp.lt.u32.totalorder %s992_s30, %s1102_s2 }
  0x3c   : > { %p778_p4 = scmp.lt.u32.totalorder %s776_s26, %s771_s7  ;;  %p780_p7 = scmp.lt.u32.totalorder %s771_s7, %s992_s30 }
  0x3d   : > { %p774_p8 = pnand %p772_p5, %p743_p10 }
  0x3e   : > { %p779_p6 = por %p778_p4, %p777_p3 }
  0x3f   : > { %p775_p13 = pneg %p774_p8 }
  0x40   : > { %p781_p11 = por %p780_p7, %p779_p6 }
  0x42   : > { %p782_p0 = pnand %p781_p11, %p775_p13 }
  0x44   : > { %785 = shalt.err (!%p782_p0)
}
  0x45   : > { %s786_s25 = scalar_lea.vmem %s996_s5, 256  ;;  %s849_s8 = smov [#allocation6]  }
  0x46   : > { %p787_p1 = scmp.ne.s32.totalorder %s996_s5, %s786_s25  ;;  %s791_s9 = sshll.u32 %s849_s8, 4  ;;  %s792_s9 = int_to_ptr.vmem [resolvable:$false] %s791_s9 }
  0x47   : > { %s793_s10 = scalar_lea.vmem %s792_s9, 512  ;;  %p794_p8 = scmp.lt.s32.totalorder %s996_s5, %s792_s9 }
  0x48   : > { %p789_p2 = pnand %p787_p1, %p743_p10  ;;  %p795_p3 = scmp.lt.s32.totalorder %s793_s10, %s786_s25 }
  0x4a   : > { %p790_p5 = pneg %p789_p2  ;;  %p796_p4 = por %p795_p3, %p794_p8 }
  0x4c   : > { %p797_p6 = pnand %p796_p4, %p790_p5 }
  0x4e   : > { %800 = shalt.err (!%p797_p6)
}
  0x4f   : > { %679 = dma.hbm_to_vmem [thread:$0]  (!%p925_p12), %s992_s30, 256, %s996_s5, %s168_s6, %s847_s11, %s847_s11, %s848_s18  }
  0x50   : > { %190 = sbr.rel (%p915_p9) target bundleno = 1388 (0x56c), region = 32  ;;  %p1109_p10 = scmp.eq.s32.totalorder (!%p915_p9), %s891_s16, 0 }
  0x57   : > { %818 = dma.done.wait (%p1109_p10), [#allocation4], 64   ;;  %p1110_p13 = pmov %p1109_p10 }
  0x58   : > { %s196_s24 = sand.u32 1, %s835_s13   ;;  %p1111_p7 = scmp.ne.s32.totalorder %s1106_s21, 0 }
  0x59   : > { %820 = vsyncadd (%p1110_p13), [#allocation4], 4294967232  ;;  %s641_s28 = sshll.u32 %s196_s24, 4  ;;  %s197_s29 = scalar_lea.sflag [#allocation3], %s196_s24 }
  0x5a   : > { %s200_s4 = scalar_lea.vmem [#allocation5], %s641_s28 }
  0x5b   : > { %822 = dma.done.wait (%p1111_p7), %s197_s29, 256  }
  0x5c   : > { %824 = vsyncadd (%p1111_p7), %s197_s29, 4294967040  ;;  %s206_s22 = scalar_lea.sflag [#allocation7], %s196_s24  ;;  %s209_s23 = scalar_lea.vmem [#allocation6], %s641_s28 }
  0x5d   : > { %826 = dma.done.wait (%p1111_p7), %s206_s22, 256  }
  0x5e   : > { %828 = vsyncadd (%p1111_p7), %s206_s22, 4294967040 }
  0x5f   : > { %214 = sfence }
  0x60   : > { %s243_s11 = sld [smem:[#allocation2]]  ;;  %s643_s18 = sld [smem:[#allocation2 + $0x1]]  ;;  %v239_v0 = vld [vmem:[%s200_s4] sm:$0xff]  ;;  %v240_v1 = vld [vmem:[%s200_s4 + $0x8] sm:$0xff]  ;;  %v294_v48 = vlaneseq  ;;  %vm533_vm10 = vcmask 0  }
  0x61   : > { %s644_s30 = sld [smem:[#allocation2 + $0x2]]  ;;  %v241_v2 = vld [vmem:[%s209_s23] sm:$0xff]  ;;  %v242_v3 = vld [vmem:[%s209_s23 + $0x8] sm:$0xff]  ;;  %s850_s21 = smov 127  }
  0x62   : > { %s851_s5 = smov 1   ;;  %s646_s6 = sld [smem:[#allocation2 + $0x81]]  ;;  %v1046_v49 = vand.u32 127, %v294_v48 }
  0x63   : > { %s645_s7 = sld [smem:[#allocation2 + $0x80]]  ;;  %s647_s15 = sld [smem:[#allocation2 + $0x82]] }
  0x64   : > { %vm296_vm2 = vcmp.ne.s32.totalorder %v1046_v49, 0  ;;  %vm297_vm3 = vcmp.ne.s32.totalorder %v1046_v49, 127  ;;  %s648_s12 = sld [smem:[#allocation2 + $0x83]]  ;;  %s649_s26 = sld [smem:[#allocation2 + $0x100]] }
  0x65   : > { %s650_s19 = sld [smem:[#allocation2 + $0x101]]  ;;  %s651_s27 = sld [smem:[#allocation2 + $0x102]] }
  0x66   : > { %v244_v4 = vstv %s243_s11  ;;  %v248_v7 = vstv %s643_s18  ;;  %s652_s25 = sld [smem:[#allocation2 + $0x103]]  ;;  %s653_s8 = sld [smem:[#allocation2 + $0x180]] }
  0x67   : > { %v245_v5 = vmul.f32 %v244_v4, %v239_v0  ;;  %v246_v6 = vmul.f32 %v244_v4, %v240_v1  ;;  %v249_v8 = vmul.f32 %v248_v7, %v241_v2  ;;  %v250_v9 = vmul.f32 %v248_v7, %v242_v3  ;;  %s654_s9 = sld [smem:[#allocation2 + $0x181]]  ;;  %s655_s10 = sld [smem:[#allocation2 + $0x182]] }
  0x68   : > { %v254_v10 = vstv %s644_s30  ;;  %v321_v50 = vstv %s646_s6  ;;  %s656_s24 = sld [smem:[#allocation2 + $0x183]]  ;;  %p236_p9 = scmp.lt.s32.totalorder %s891_s16, 1 }
  0x69   : > { %v251_v11 = vadd.f32 %v249_v8, %v245_v5  ;;  %v252_v12 = vadd.f32 %v250_v9, %v246_v6  ;;  %v317_v51 = vstv %s645_s7  ;;  %v327_v57 = vstv %s647_s15 }
  0x6a   : > { %v333_v3 = vstv %s648_s12  ;;  %s1117_s16 = smov (!%p236_p9, %s891_s16), 1 }
  0x6b   : > { %v255_v13 = vadd.f32 %v254_v10, %v251_v11  ;;  %v256_v14 = vadd.f32 %v254_v10, %v252_v12  ;;  %s238_s4 = scalar_lea.vmem %s1103_s3, %s1117_s16 }
  0x6d   : > { %v257_v15 = vadd.f32 %v256_v14, %v255_v13  ;;  %v266_v16 = vmul.f32 %v255_v13, %v255_v13  ;;  %v267_v17 = vmul.f32 %v256_v14, %v256_v14 }
  0x6f   : > { %258 = vadd.xlane.f32.xlu0 %v257_v15  ;;  %v268_v18 = vadd.f32 %v267_v17, %v266_v16 }
  0x73   : > { %269 = vadd.xlane.f32.xlu0 %v268_v18 }
  0xfc   : > { %v259_v19 = vpop.xlane.xlu0 %258 }
  0xfd   : > { %v260_v20 = vrot.slane %v259_v19, 4 }
  0xff   : > { %v261_v21 = vadd.f32 %v260_v20, %v259_v19 }
 0x100   : > { %v270_v22 = vpop.xlane.xlu0 %269 }
 0x101   : > { %v262_v23 = vrot.slane %v261_v21, 2  ;;  %v271_v24 = vrot.slane %v270_v22, 4 }
 0x103   : > { %v263_v25 = vadd.f32 %v262_v23, %v261_v21  ;;  %v272_v26 = vadd.f32 %v271_v24, %v270_v22 }
 0x105   : > { %v264_v27 = vrot.slane %v263_v25, 1  ;;  %v273_v28 = vrot.slane %v272_v26, 2 }
 0x107   : > { %v265_v29 = vadd.f32 %v264_v27, %v263_v25  ;;  %v274_v30 = vadd.f32 %v273_v28, %v272_v26 }
 0x109   : > { %v277_v31 = vmul.f32 0.00048828125, %v265_v29  ;;  %v275_v32 = vrot.slane %v274_v30, 1 }
 0x10b   : > { %v276_v33 = vadd.f32 %v275_v32, %v274_v30  ;;  %v279_v34 = vmul.f32 %v277_v31, %v277_v31  ;;  %v282_v39 = vsub.f32 %v255_v13, %v277_v31  ;;  %v283_v40 = vsub.f32 %v256_v14, %v277_v31 }
 0x10d   : > { %v278_v35 = vmul.f32 0.00048828125, %v276_v33 }
 0x10f   : > { %v280_v36 = vsub.f32 %v278_v35, %v279_v34 }
 0x111   : > { %v281_v37 = vmax.f32 %v280_v36, 0.0 }
 0x113   : > { %v284_v38 = vadd.f32 1e-05, %v281_v37 }
 0x115   : > { %720 = vrsqrt.f32 %v284_v38 }
 0x11f   : > { %v721_v41 = vpop.eup %720 }
 0x120   : > { %v286_v42 = vmul.f32 %v721_v41, %v282_v39  ;;  %v287_v43 = vmul.f32 %v721_v41, %v283_v40 }
 0x122   : > { %vm288_vm0 = vcmp.ge.f32.partialorder %v286_v42, 0.0  ;;  %v290_v44 = vmul.f32 0.01, %v286_v42  ;;  %v291_v46 = vmul.f32 0.01, %v287_v43  ;;  %vm289_vm1 = vcmp.ge.f32.partialorder %v287_v43, 0.0 }
 0x124   : > { %v292_v45 = vsel %vm288_vm0, %v286_v42, %v290_v44  ;;  %v293_v47 = vsel %vm289_vm1, %v287_v43, %v291_v46  ;;  %v392_v43 = vstv %s649_s26  ;;  %v396_v46 = vstv %s650_s19 }
 0x125   : > { %308 = vrot.lane.b32.xlu0 %v292_v45, %s850_s21  ;;  %300 = vrot.lane.b32.xlu1 %v292_v45, %s851_s5  ;;  %v322_v55 = vmul.f32 %v321_v50, %v292_v45  ;;  %v323_v0 = vmul.f32 %v321_v50, %v293_v47 }
 0x129   : > { %302 = vrot.lane.b32.xlu1 %v293_v47, %s851_s5 }
 0x12d   : > { %310 = vrot.lane.b32.xlu1 %v293_v47, %s850_s21 }
 0x197   : > { %v309_v52 = vpop.permute.xlu0 %308  ;;  %v301_v53 = vpop.permute.xlu1 %300 }
 0x198   : > { %v306_v54 = vsel %vm296_vm2, %v301_v53, 0.0  ;;  %v314_v58 = vsel %vm297_vm3, %v309_v52, 0.0 }
 0x199   : > { %v318_v56 = vmul.f32 %v317_v51, %v306_v54  ;;  %v328_v62 = vmul.f32 %v327_v57, %v314_v58 }
 0x19b   : > { %v324_v59 = vadd.f32 %v322_v55, %v318_v56  ;;  %v303_v60 = vpop.permute.xlu1 %302 }
 0x19c   : > { %v307_v61 = vsel %vm296_vm2, %v303_v60, 0.0 }
 0x19d   : > { %v319_v63 = vmul.f32 %v317_v51, %v307_v61  ;;  %v330_v1 = vadd.f32 %v328_v62, %v324_v59  ;;  %v402_v51 = vstv %s651_s27  ;;  %v408_v61 = vstv %s652_s25 }
 0x19f   : > { %v311_v2 = vpop.permute.xlu1 %310  ;;  %v325_v5 = vadd.f32 %v323_v0, %v319_v63  ;;  %v334_v8 = vadd.f32 %v333_v3, %v330_v1 }
 0x1a0   : > { %v315_v4 = vsel %vm297_vm3, %v311_v2, 0.0 }
 0x1a1   : > { %v329_v6 = vmul.f32 %v327_v57, %v315_v4  ;;  %v345_v11 = vmul.f32 %v334_v8, %v334_v8 }
 0x1a3   : > { %v331_v7 = vadd.f32 %v329_v6, %v325_v5 }
 0x1a5   : > { %v335_v9 = vadd.f32 %v333_v3, %v331_v7 }
 0x1a7   : > { %v336_v10 = vadd.f32 %v335_v9, %v334_v8  ;;  %v346_v12 = vmul.f32 %v335_v9, %v335_v9 }
 0x1a9   : > { %337 = vadd.xlane.f32.xlu1 %v336_v10  ;;  %v347_v13 = vadd.f32 %v346_v12, %v345_v11 }
 0x1ab   : > { %348 = vadd.xlane.f32.xlu0 %v347_v13 }
 0x236   : > { %v338_v14 = vpop.xlane.xlu1 %337 }
 0x237   : > { %v339_v15 = vrot.slane %v338_v14, 4 }
 0x238   : > { %v349_v16 = vpop.xlane.xlu0 %348 }
 0x239   : > { %v340_v17 = vadd.f32 %v339_v15, %v338_v14  ;;  %v350_v18 = vrot.slane %v349_v16, 4 }
 0x23b   : > { %v341_v19 = vrot.slane %v340_v17, 2  ;;  %v351_v20 = vadd.f32 %v350_v18, %v349_v16 }
 0x23d   : > { %v342_v21 = vadd.f32 %v341_v19, %v340_v17  ;;  %v352_v22 = vrot.slane %v351_v20, 2 }
 0x23f   : > { %v343_v23 = vrot.slane %v342_v21, 1  ;;  %v353_v24 = vadd.f32 %v352_v22, %v351_v20 }
 0x241   : > { %v344_v25 = vadd.f32 %v343_v23, %v342_v21  ;;  %v354_v26 = vrot.slane %v353_v24, 1 }
 0x243   : > { %v356_v27 = vmul.f32 0.00048828125, %v344_v25  ;;  %v355_v28 = vadd.f32 %v354_v26, %v353_v24 }
 0x245   : > { %v357_v29 = vmul.f32 0.00048828125, %v355_v28  ;;  %v358_v30 = vmul.f32 %v356_v27, %v356_v27  ;;  %v362_v34 = vsub.f32 %v335_v9, %v356_v27  ;;  %v361_v35 = vsub.f32 %v334_v8, %v356_v27 }
 0x247   : > { %v359_v31 = vsub.f32 %v357_v29, %v358_v30 }
 0x249   : > { %v360_v32 = vmax.f32 %v359_v31, 0.0 }
 0x24b   : > { %v363_v33 = vadd.f32 1e-05, %v360_v32 }
 0x24d   : > { %722 = vrsqrt.f32 %v363_v33 }
 0x257   : > { %v723_v36 = vpop.eup %722 }
 0x258   : > { %v366_v37 = vmul.f32 %v723_v36, %v362_v34  ;;  %v365_v38 = vmul.f32 %v723_v36, %v361_v35 }
 0x25a   : > { %vm368_vm4 = vcmp.ge.f32.partialorder %v366_v37, 0.0  ;;  %v370_v39 = vmul.f32 0.01, %v366_v37  ;;  %vm367_vm5 = vcmp.ge.f32.partialorder %v365_v38, 0.0  ;;  %v369_v40 = vmul.f32 0.01, %v365_v38 }
 0x25c   : > { %v372_v41 = vsel %vm368_vm4, %v366_v37, %v370_v39  ;;  %v371_v42 = vsel %vm367_vm5, %v365_v38, %v369_v40  ;;  %v467_v37 = vstv %s653_s8  ;;  %v471_v40 = vstv %s654_s9 }
 0x25d   : > { %377 = vrot.lane.b32.xlu0 %v372_v41, %s851_s5  ;;  %375 = vrot.lane.b32.xlu1 %v371_v42, %s851_s5  ;;  %v397_v52 = vmul.f32 %v396_v46, %v371_v42  ;;  %v398_v58 = vmul.f32 %v396_v46, %v372_v41 }
 0x261   : > { %383 = vrot.lane.b32.xlu1 %v371_v42, %s850_s21 }
 0x265   : > { %385 = vrot.lane.b32.xlu1 %v372_v41, %s850_s21 }
 0x2cf   : > { %v378_v44 = vpop.permute.xlu0 %377  ;;  %v376_v45 = vpop.permute.xlu1 %375 }
 0x2d0   : > { %v381_v47 = vsel %vm296_vm2, %v376_v45, 0.0  ;;  %v382_v50 = vsel %vm296_vm2, %v378_v44, 0.0  ;;  %v477_v44 = vstv %s655_s10 }
 0x2d1   : > { %v393_v48 = vmul.f32 %v392_v43, %v381_v47  ;;  %v394_v55 = vmul.f32 %v392_v43, %v382_v50 }
 0x2d3   : > { %v384_v53 = vpop.permute.xlu1 %383  ;;  %v399_v56 = vadd.f32 %v397_v52, %v393_v48  ;;  %v400_v63 = vadd.f32 %v398_v58, %v394_v55  ;;  %v483_v55 = vstv %s656_s24 }
 0x2d4   : > { %v389_v54 = vsel %vm297_vm3, %v384_v53, 0.0 }
 0x2d5   : > { %v403_v57 = vmul.f32 %v402_v51, %v389_v54 }
 0x2d7   : > { %v405_v59 = vadd.f32 %v403_v57, %v399_v56  ;;  %v386_v60 = vpop.permute.xlu1 %385 }
 0x2d8   : > { %v390_v62 = vsel %vm297_vm3, %v386_v60, 0.0 }
 0x2d9   : > { %v404_v0 = vmul.f32 %v402_v51, %v390_v62  ;;  %v409_v1 = vadd.f32 %v408_v61, %v405_v59 }
 0x2db   : > { %v406_v2 = vadd.f32 %v404_v0, %v400_v63  ;;  %v420_v5 = vmul.f32 %v409_v1, %v409_v1 }
 0x2dd   : > { %v410_v3 = vadd.f32 %v408_v61, %v406_v2 }
 0x2df   : > { %v411_v4 = vadd.f32 %v410_v3, %v409_v1  ;;  %v421_v6 = vmul.f32 %v410_v3, %v410_v3 }
 0x2e1   : > { %412 = vadd.xlane.f32.xlu1 %v411_v4  ;;  %v422_v7 = vadd.f32 %v421_v6, %v420_v5 }
 0x2e3   : > { %423 = vadd.xlane.f32.xlu0 %v422_v7 }
 0x36e   : > { %v413_v8 = vpop.xlane.xlu1 %412 }
 0x36f   : > { %v414_v9 = vrot.slane %v413_v8, 4 }
 0x370   : > { %v424_v10 = vpop.xlane.xlu0 %423 }
 0x371   : > { %v415_v11 = vadd.f32 %v414_v9, %v413_v8  ;;  %v425_v12 = vrot.slane %v424_v10, 4 }
 0x373   : > { %v416_v13 = vrot.slane %v415_v11, 2  ;;  %v426_v14 = vadd.f32 %v425_v12, %v424_v10 }
 0x375   : > { %v417_v15 = vadd.f32 %v416_v13, %v415_v11  ;;  %v427_v16 = vrot.slane %v426_v14, 2 }
 0x377   : > { %v418_v17 = vrot.slane %v417_v15, 1  ;;  %v428_v18 = vadd.f32 %v427_v16, %v426_v14 }
 0x379   : > { %v419_v19 = vadd.f32 %v418_v17, %v417_v15  ;;  %v429_v20 = vrot.slane %v428_v18, 1 }
 0x37b   : > { %v431_v21 = vmul.f32 0.00048828125, %v419_v19  ;;  %v430_v22 = vadd.f32 %v429_v20, %v428_v18 }
 0x37d   : > { %v432_v23 = vmul.f32 0.00048828125, %v430_v22  ;;  %v433_v24 = vmul.f32 %v431_v21, %v431_v21  ;;  %v437_v28 = vsub.f32 %v410_v3, %v431_v21  ;;  %v436_v29 = vsub.f32 %v409_v1, %v431_v21 }
 0x37f   : > { %v434_v25 = vsub.f32 %v432_v23, %v433_v24 }
 0x381   : > { %v435_v26 = vmax.f32 %v434_v25, 0.0 }
 0x383   : > { %v438_v27 = vadd.f32 1e-05, %v435_v26 }
 0x385   : > { %724 = vrsqrt.f32 %v438_v27 }
 0x38f   : > { %v725_v30 = vpop.eup %724 }
 0x390   : > { %v441_v31 = vmul.f32 %v725_v30, %v437_v28  ;;  %v440_v32 = vmul.f32 %v725_v30, %v436_v29 }
 0x392   : > { %vm443_vm6 = vcmp.ge.f32.partialorder %v441_v31, 0.0  ;;  %v445_v33 = vmul.f32 0.01, %v441_v31  ;;  %vm442_vm7 = vcmp.ge.f32.partialorder %v440_v32, 0.0  ;;  %v444_v34 = vmul.f32 0.01, %v440_v32 }
 0x394   : > { %v447_v35 = vsel %vm443_vm6, %v441_v31, %v445_v33  ;;  %v446_v36 = vsel %vm442_vm7, %v440_v32, %v444_v34 }
 0x395   : > { %452 = vrot.lane.b32.xlu0 %v447_v35, %s851_s5  ;;  %450 = vrot.lane.b32.xlu1 %v446_v36, %s851_s5  ;;  %v472_v45 = vmul.f32 %v471_v40, %v446_v36  ;;  %v473_v52 = vmul.f32 %v471_v40, %v447_v35 }
 0x399   : > { %458 = vrot.lane.b32.xlu1 %v446_v36, %s850_s21 }
 0x39d   : > { %460 = vrot.lane.b32.xlu1 %v447_v35, %s850_s21 }
 0x407   : > { %v453_v38 = vpop.permute.xlu0 %452  ;;  %v451_v39 = vpop.permute.xlu1 %450 }
 0x408   : > { %v456_v41 = vsel %vm296_vm2, %v451_v39, 0.0  ;;  %v457_v43 = vsel %vm296_vm2, %v453_v38, 0.0 }
 0x409   : > { %v468_v42 = vmul.f32 %v467_v37, %v456_v41  ;;  %v469_v48 = vmul.f32 %v467_v37, %v457_v43 }
 0x40b   : > { %v459_v46 = vpop.permute.xlu1 %458  ;;  %v474_v50 = vadd.f32 %v472_v45, %v468_v42  ;;  %v475_v57 = vadd.f32 %v473_v52, %v469_v48 }
 0x40c   : > { %v464_v47 = vsel %vm297_vm3, %v459_v46, 0.0 }
 0x40d   : > { %v478_v51 = vmul.f32 %v477_v44, %v464_v47 }
 0x40f   : > { %v480_v53 = vadd.f32 %v478_v51, %v474_v50  ;;  %v461_v54 = vpop.permute.xlu1 %460 }
 0x410   : > { %v465_v56 = vsel %vm297_vm3, %v461_v54, 0.0 }
 0x411   : > { %v479_v58 = vmul.f32 %v477_v44, %v465_v56  ;;  %v484_v59 = vadd.f32 %v483_v55, %v480_v53 }
 0x413   : > { %v481_v60 = vadd.f32 %v479_v58, %v475_v57  ;;  %v495_v63 = vmul.f32 %v484_v59, %v484_v59 }
 0x415   : > { %v485_v61 = vadd.f32 %v483_v55, %v481_v60 }
 0x417   : > { %v486_v62 = vadd.f32 %v485_v61, %v484_v59  ;;  %v496_v0 = vmul.f32 %v485_v61, %v485_v61 }
 0x419   : > { %487 = vadd.xlane.f32.xlu1 %v486_v62  ;;  %v497_v1 = vadd.f32 %v496_v0, %v495_v63 }
 0x41b   : > { %498 = vadd.xlane.f32.xlu0 %v497_v1 }
 0x4a6   : > { %v488_v2 = vpop.xlane.xlu1 %487 }
 0x4a7   : > { %v489_v3 = vrot.slane %v488_v2, 4 }
 0x4a8   : > { %v499_v4 = vpop.xlane.xlu0 %498 }
 0x4a9   : > { %v490_v5 = vadd.f32 %v489_v3, %v488_v2  ;;  %v500_v6 = vrot.slane %v499_v4, 4 }
 0x4ab   : > { %v491_v7 = vrot.slane %v490_v5, 2  ;;  %v501_v8 = vadd.f32 %v500_v6, %v499_v4 }
 0x4ad   : > { %v492_v49 = vadd.f32 %v491_v7, %v490_v5  ;;  %v502_v9 = vrot.slane %v501_v8, 2 }
 0x4af   : > { %v493_v10 = vrot.slane %v492_v49, 1  ;;  %v503_v11 = vadd.f32 %v502_v9, %v501_v8 }
 0x4b1   : > { %v494_v12 = vadd.f32 %v493_v10, %v492_v49  ;;  %v504_v13 = vrot.slane %v503_v11, 1 }
 0x4b3   : > { %v506_v14 = vmul.f32 0.00048828125, %v494_v12  ;;  %v505_v15 = vadd.f32 %v504_v13, %v503_v11 }
 0x4b5   : > { %v508_v16 = vmul.f32 %v506_v14, %v506_v14  ;;  %v507_v17 = vmul.f32 0.00048828125, %v505_v15  ;;  %v511_v21 = vsub.f32 %v484_v59, %v506_v14  ;;  %v512_v22 = vsub.f32 %v485_v61, %v506_v14 }
 0x4b7   : > { %v509_v18 = vsub.f32 %v507_v17, %v508_v16 }
 0x4b9   : > { %v510_v19 = vmax.f32 %v509_v18, 0.0 }
 0x4bb   : > { %v513_v20 = vadd.f32 1e-05, %v510_v19 }
 0x4bd   : > { %726 = vrsqrt.f32 %v513_v20 }
 0x4c7   : > { %v727_v23 = vpop.eup %726 }
 0x4c8   : > { %v515_v24 = vmul.f32 %v727_v23, %v511_v21  ;;  %v516_v25 = vmul.f32 %v727_v23, %v512_v22 }
 0x4ca   : > { %vm517_vm8 = vcmp.ge.f32.partialorder %v515_v24, 0.0  ;;  %vm518_vm9 = vcmp.ge.f32.partialorder %v516_v25, 0.0  ;;  %v519_v26 = vmul.f32 0.01, %v515_v24  ;;  %v520_v27 = vmul.f32 0.01, %v516_v25 }
 0x4cc   : > { %v521_v28 = vsel %vm517_vm8, %v515_v24, %v519_v26  ;;  %v522_v29 = vsel %vm518_vm9, %v516_v25, %v520_v27 }
 0x4cd   : > { %v523_v30 = vadd.f32 %v522_v29, %v521_v28 }
 0x4cf   : > { %524 = vadd.xlane.f32.xlu0 %v523_v30 }
 0x55c   : > { %v525_v31 = vpop.xlane.xlu0 %524 }
 0x55d   : > { %v526_v32 = vrot.slane %v525_v31, 4 }
 0x55f   : > { %v527_v33 = vadd.f32 %v526_v32, %v525_v31 }
 0x561   : > { %v528_v34 = vrot.slane %v527_v33, 2 }
 0x563   : > { %v529_v35 = vadd.f32 %v528_v34, %v527_v33 }
 0x565   : > { %v530_v36 = vrot.slane %v529_v35, 1 }
 0x567   : > { %v531_v37 = vadd.f32 %v530_v36, %v529_v35 }
 0x569   : > { %v532_v38 = vmul.f32 0.00048828125, %v531_v37 }
 0x56b   : > { %534 = vst.msk [vmem:[%s238_s4] sm:$0x1] %vm533_vm10, %v532_v38 }
 0x56c PF: > { %p17_p12 = scmp.ge.s32.totalorder %s894_s17, 4   ;;  %s1112_s12 = smov %s835_s13 }
 0x56d   : > { %s1113_s13 = smov %s839_s14  ;;  %s1114_s14 = smov %s904_s20 }
 0x56e   : > { %s1115_s15 = smov %s894_s17  ;;  %19 = sbr.rel (!%p17_p12) target bundleno = 6 (0x6), region = 90 }
 0x575   :  { %552 = vsyncpa [#allocation3], 1 }
 0x576   :  { %554 = vsyncpa [#allocation3 + $0x1], 1 }
 0x577   :  { %555 = vsyncpa [#allocation7], 1 }
 0x578   :  { %557 = vsyncpa [#allocation7 + $0x1], 1 }
 0x579   :  { %558 = vsyncpa [#allocation4], 1 }
 0x57a   :  { %560 = vsyncpa [#allocation4 + $0x1], 1 }

</bundles_post_ra>
